<compile_context>
chip_gen: v7x
topology: tpu7x:2x2x1
jax: 0.10.0
libtpu: 0.0.40
codegen_flags: <defaults>
</compile_context>

<pallas_src>
import jax
import jax.numpy as jnp
from jax import lax
from jax.experimental import pallas as pl
from jax.experimental.pallas import tpu as pltpu


# ----------------------------- Pallas kernel --------------------------------
def _conv_fold_kernel(t_ref, w_ref, b_ref, o_ref):
    """Folded-K conv tile: ReLU((TM, 9*Cin) @ (9*Cin, Cout) + bias).

    t_ref: (TM, 9*Cin)   bf16  -- im2col taps for TM output pixels (streamed)
    w_ref: (9*Cin, Cout) bf16  -- folded weights (resident; constant index_map)
    b_ref: (1, Cout)     f32   -- bias (resident)
    o_ref: (TM, Cout)    bf16  -- ReLU(conv) output rows
    """
    acc = jnp.dot(t_ref[...], w_ref[...], preferred_element_type=jnp.float32)
    acc = acc + b_ref[...]
    o_ref[...] = jnp.maximum(acc, 0.0).astype(o_ref.dtype)


def _pick_tile_m(m: int, cap: int = 2048) -> int:
    """Row tile: multiple of 8, <= cap, and small enough that the grid has at
    least 2 'parallel' steps whenever m > 8 (keeps both v7x TensorCores busy).
    No divisor requirement -- the wrapper pads M up to a multiple of the tile."""
    half = pl.cdiv(m, 2)
    tm = ((half + 7) // 8) * 8
    return max(8, min(cap, tm))


def _conv3x3_s2_relu(x_nhwc, w_fold, b_row):
    """3x3 conv, stride 2, pad 1, bias, ReLU.

    x_nhwc: (N, H, W, Cin) bf16 activation
    w_fold: (9*Cin, Cout)  bf16 folded per-tap weights (tap-major, channel-minor)
    b_row:  (1, Cout)      f32  bias
    returns (N, Ho, Wo, Cout) bf16
    """
    x_nhwc = x_nhwc.astype(jnp.bfloat16)
    N, H, W, Cin = x_nhwc.shape
    K, Cout = w_fold.shape
    assert K == 9 * Cin
    Ho = (H + 2 - 3) // 2 + 1
    Wo = (W + 2 - 3) // 2 + 1
    M = N * Ho * Wo

    # Fold the 9 taps into the contraction dim: (M, 9*Cin).  Stride-2 slices keep
    # the slab at ~2.25x the input bytes (not a 9x im2col), all in bf16.
    xp = jnp.pad(x_nhwc, ((0, 0), (1, 1), (1, 1), (0, 0)))
    taps = jnp.concatenate(
        [xp[:, dy:dy + 2 * Ho - 1:2, dx:dx + 2 * Wo - 1:2, :]
         for dy in range(3) for dx in range(3)],
        axis=-1,
    ).reshape(M, K)

    TM = _pick_tile_m(M)
    gm = pl.cdiv(M, TM)
    Mp = gm * TM
    if Mp != M:
        taps = jnp.pad(taps, ((0, Mp - M), (0, 0)))  # pad rows; sliced off below

    out = pl.pallas_call(
        _conv_fold_kernel,
        out_shape=jax.ShapeDtypeStruct((Mp, Cout), jnp.bfloat16),
        grid=(gm,),
        in_specs=[
            pl.BlockSpec((TM, K), lambda i: (i, 0)),        # streamed over M
            pl.BlockSpec((K, Cout), lambda i: (0, 0)),      # resident weights
            pl.BlockSpec((1, Cout), lambda i: (0, 0)),      # resident bias
        ],
        out_specs=pl.BlockSpec((TM, Cout), lambda i: (i, 0)),
        compiler_params=pltpu.CompilerParams(
            dimension_semantics=("parallel",),              # megacore / v7x dual-TC
            vmem_limit_bytes=32 * 1024 * 1024,              # headroom on v5e's 16 MiB default
        ),
    )(taps, w_fold, b_row)

    return out[:M].reshape(N, Ho, Wo, Cout)


# ------------------------ GenericTimmExtractor stand-in ----------------------
class GenericTimmExtractorPallas:
    """Mirrors GenericTimmExtractor.forward(img_nchw) -> single NCHW feature map."""

    _STAGE_CHANNELS = (8, 16, 32, 64)  # synthetic "timm" stage widths

    def __init__(self, model_name: str, feature_index: int, key):
        del model_name  # synthetic backbone; name kept for API parity
        self.feature_index = feature_index
        self.params = []      # per stage: (w_fold bf16 (9*Cin, Cout), bias f32 (1, Cout))
        self.raw_params = []  # per stage: (w f32 (Cout,Cin,3,3), b f32 (Cout,)) for reference

        cin = 3  # stage-0 input is the raw 3-channel image
        for s in range(feature_index + 1):
            cout = self._STAGE_CHANNELS[s]
            key, kw, kb = jax.random.split(key, 3)
            w = jax.random.normal(kw, (cout, cin, 3, 3), jnp.float32) * 0.05
            b = jax.random.normal(kb, (cout,), jnp.float32) * 0.01
            self.raw_params.append((w, b))

            # (Cout,Cin,kh,kw) -> (kh,kw,Cin,Cout) -> (9*Cin, Cout): tap-major,
            # channel-minor -- matches the tap concatenation order in the wrapper.
            w_fold = jnp.transpose(w, (2, 3, 1, 0)).reshape(9 * cin, cout).astype(jnp.bfloat16)
            b_row = b.reshape(1, cout).astype(jnp.float32)
            self.params.append((w_fold, b_row))
            cin = cout

        self._feature_channels = cin
        self._jit_forward = jax.jit(self._forward)

    @property
    def feature_channels(self):
        return self._feature_channels

    def _forward(self, img_nchw):
        # NCHW -> NHWC, bf16 for the MXU / halved HBM traffic.
        x = jnp.transpose(img_nchw, (0, 2, 3, 1)).astype(jnp.bfloat16)
        for (w_fold, b_row) in self.params:
            x = _conv3x3_s2_relu(x, w_fold, b_row)   # (N, Ho, Wo, Cout) true width
        x = x.astype(jnp.float32)
        return jnp.transpose(x, (0, 3, 1, 2))        # NHWC -> NCHW

    def __call__(self, img_nchw):
        return self._jit_forward(img_nchw)


# ----------------------------- pure-JAX reference ----------------------------
def _reference_forward(img_nchw, raw_params):
    x = jnp.transpose(img_nchw, (0, 2, 3, 1))
    for w, b in raw_params:
        x = lax.conv_general_dilated(
            x, jnp.transpose(w, (2, 3, 1, 0)),
            window_strides=(2, 2), padding=((1, 1), (1, 1)),
            dimension_numbers=("NHWC", "HWIO", "NHWC"))
        x = jnp.maximum(x + b, 0.0)
    return jnp.transpose(x, (0, 3, 1, 2))


# ----------------------------------- main ------------------------------------
if __name__ == "__main__":
    key = jax.random.PRNGKey(0)
    key, kimg = jax.random.split(key)

    # Small NCHW input consistent with the module's image interface.
    img = jax.random.normal(kimg, (2, 3, 16, 16), jnp.float32)

    extractor = GenericTimmExtractorPallas("resnet_like_synthetic", feature_index=1, key=key)
    feats = jax.block_until_ready(extractor(img))

    # stage 0: 16x16 -> 8x8 (8 ch); stage 1: 8x8 -> 4x4 (16 ch)
    assert feats.shape == (2, extractor.feature_channels, 4, 4), feats.shape
    assert feats.dtype == jnp.float32
    assert bool(jnp.all(feats >= 0.0))  # ReLU output

    # Numerics vs f32 XLA conv reference (loose tolerance for bf16 operands).
    ref = jax.block_until_ready(_reference_forward(img, extractor.raw_params))
    err = float(jnp.max(jnp.abs(feats - ref)))
    assert err < 5e-2, err

    print("KERNEL_OK")
</pallas_src>

<mosaic_0001>
module attributes {stable_mosaic.version = 11 : i64} {
  func.func @_conv_fold_kernel(%arg0: i32, %arg1: memref<64x27xbf16, #tpu.memory_space<vmem>>, %arg2: memref<27x8xbf16, #tpu.memory_space<vmem>>, %arg3: memref<1x8xf32, #tpu.memory_space<vmem>>, %arg4: memref<64x8xbf16, #tpu.memory_space<vmem>>) attributes {dimension_semantics = [#tpu.dimension_semantics<parallel>], iteration_bounds = array<i64: 2>, scalar_prefetch = 0 : i64, scratch_operands = 0 : i64, tpu.core_type = #tpu.core_type<tc>, window_params = [{transform_indices = @transform_0, window_bounds = array<i64: 64, 27>}, {pipeline_mode = #tpu.pipeline_mode<synchronous>, transform_indices = @transform_1, window_bounds = array<i64: 27, 8>}, {pipeline_mode = #tpu.pipeline_mode<synchronous>, transform_indices = @transform_2, window_bounds = array<i64: 1, 8>}, {transform_indices = @transform_3, window_bounds = array<i64: 64, 8>}]} {
    %c0 = arith.constant 0 : index
    %c0_0 = arith.constant 0 : index
    %0 = vector.load %arg1[%c0, %c0_0] : memref<64x27xbf16, #tpu.memory_space<vmem>>, vector<64x27xbf16>
    %c0_1 = arith.constant 0 : index
    %c0_2 = arith.constant 0 : index
    %1 = vector.load %arg2[%c0_1, %c0_2] : memref<27x8xbf16, #tpu.memory_space<vmem>>, vector<27x8xbf16>
    %cst = arith.constant dense<0.000000e+00> : vector<64x8xf32>
    %2 = tpu.matmul %0, %1, %cst {dimension_numbers = #tpu.dot_dimension_numbers<[1], [0], [0], [1], [0, 0, 1, 1], [], []>} : vector<64x27xbf16>, vector<27x8xbf16>, vector<64x8xf32> -> vector<64x8xf32>
    %c0_3 = arith.constant 0 : index
    %c0_4 = arith.constant 0 : index
    %3 = vector.load %arg3[%c0_3, %c0_4] : memref<1x8xf32, #tpu.memory_space<vmem>>, vector<1x8xf32>
    %4 = vector.broadcast %3 : vector<1x8xf32> to vector<64x8xf32>
    %5 = arith.addf %2, %4 : vector<64x8xf32>
    %cst_5 = arith.constant 0.000000e+00 : f32
    %6 = vector.broadcast %cst_5 : f32 to vector<64x8xf32>
    %7 = arith.maximumf %5, %6 : vector<64x8xf32>
    %8 = arith.truncf %7 : vector<64x8xf32> to vector<64x8xbf16>
    %c0_6 = arith.constant 0 : index
    %c0_7 = arith.constant 0 : index
    %9 = vector.load %arg4[%c0_6, %c0_7] : memref<64x8xbf16, #tpu.memory_space<vmem>>, vector<64x8xbf16>
    tpu.vector_store %arg4[%c0_6, %c0_7], %8 {strides = array<i32>} : memref<64x8xbf16, #tpu.memory_space<vmem>>, vector<64x8xbf16>,
    return
  }
  func.func @transform_0(%arg0: i32) -> (i32, i32) {
    %c0_i32 = arith.constant 0 : i32
    %c0_i32_0 = arith.constant 0 : i32
    return %arg0, %c0_i32 : i32, i32
  }
  func.func @transform_1(%arg0: i32) -> (i32, i32) {
    %c0_i32 = arith.constant 0 : i32
    %c0_i32_0 = arith.constant 0 : i32
    %c0_i32_1 = arith.constant 0 : i32
    return %c0_i32, %c0_i32_0 : i32, i32
  }
  func.func @transform_2(%arg0: i32) -> (i32, i32) {
    %c0_i32 = arith.constant 0 : i32
    %c0_i32_0 = arith.constant 0 : i32
    %c0_i32_1 = arith.constant 0 : i32
    return %c0_i32, %c0_i32_0 : i32, i32
  }
  func.func @transform_3(%arg0: i32) -> (i32, i32) {
    %c0_i32 = arith.constant 0 : i32
    %c0_i32_0 = arith.constant 0 : i32
    return %arg0, %c0_i32 : i32, i32
  }
}

module attributes {stable_mosaic.version = 11 : i64} {
  func.func @_conv_fold_kernel(%arg0: i32, %arg1: memref<16x72xbf16, #tpu.memory_space<vmem>>, %arg2: memref<72x16xbf16, #tpu.memory_space<vmem>>, %arg3: memref<1x16xf32, #tpu.memory_space<vmem>>, %arg4: memref<16x16xbf16, #tpu.memory_space<vmem>>) attributes {dimension_semantics = [#tpu.dimension_semantics<parallel>], iteration_bounds = array<i64: 2>, scalar_prefetch = 0 : i64, scratch_operands = 0 : i64, tpu.core_type = #tpu.core_type<tc>, window_params = [{transform_indices = @transform_0, window_bounds = array<i64: 16, 72>}, {pipeline_mode = #tpu.pipeline_mode<synchronous>, transform_indices = @transform_1, window_bounds = array<i64: 72, 16>}, {pipeline_mode = #tpu.pipeline_mode<synchronous>, transform_indices = @transform_2, window_bounds = array<i64: 1, 16>}, {transform_indices = @transform_3, window_bounds = array<i64: 16, 16>}]} {
    %c0 = arith.constant 0 : index
    %c0_0 = arith.constant 0 : index
    %0 = vector.load %arg1[%c0, %c0_0] : memref<16x72xbf16, #tpu.memory_space<vmem>>, vector<16x72xbf16>
    %c0_1 = arith.constant 0 : index
    %c0_2 = arith.constant 0 : index
    %1 = vector.load %arg2[%c0_1, %c0_2] : memref<72x16xbf16, #tpu.memory_space<vmem>>, vector<72x16xbf16>
    %cst = arith.constant dense<0.000000e+00> : vector<16x16xf32>
    %2 = tpu.matmul %0, %1, %cst {dimension_numbers = #tpu.dot_dimension_numbers<[1], [0], [0], [1], [0, 0, 1, 1], [], []>} : vector<16x72xbf16>, vector<72x16xbf16>, vector<16x16xf32> -> vector<16x16xf32>
    %c0_3 = arith.constant 0 : index
    %c0_4 = arith.constant 0 : index
    %3 = vector.load %arg3[%c0_3, %c0_4] : memref<1x16xf32, #tpu.memory_space<vmem>>, vector<1x16xf32>
    %4 = vector.broadcast %3 : vector<1x16xf32> to vector<16x16xf32>
    %5 = arith.addf %2, %4 : vector<16x16xf32>
    %cst_5 = arith.constant 0.000000e+00 : f32
    %6 = vector.broadcast %cst_5 : f32 to vector<16x16xf32>
    %7 = arith.maximumf %5, %6 : vector<16x16xf32>
    %8 = arith.truncf %7 : vector<16x16xf32> to vector<16x16xbf16>
    %c0_6 = arith.constant 0 : index
    %c0_7 = arith.constant 0 : index
    %9 = vector.load %arg4[%c0_6, %c0_7] : memref<16x16xbf16, #tpu.memory_space<vmem>>, vector<16x16xbf16>
    tpu.vector_store %arg4[%c0_6, %c0_7], %8 {strides = array<i32>} : memref<16x16xbf16, #tpu.memory_space<vmem>>, vector<16x16xbf16>,
    return
  }
  func.func @transform_0(%arg0: i32) -> (i32, i32) {
    %c0_i32 = arith.constant 0 : i32
    %c0_i32_0 = arith.constant 0 : i32
    return %arg0, %c0_i32 : i32, i32
  }
  func.func @transform_1(%arg0: i32) -> (i32, i32) {
    %c0_i32 = arith.constant 0 : i32
    %c0_i32_0 = arith.constant 0 : i32
    %c0_i32_1 = arith.constant 0 : i32
    return %c0_i32, %c0_i32_0 : i32, i32
  }
  func.func @transform_2(%arg0: i32) -> (i32, i32) {
    %c0_i32 = arith.constant 0 : i32
    %c0_i32_0 = arith.constant 0 : i32
    %c0_i32_1 = arith.constant 0 : i32
    return %c0_i32, %c0_i32_0 : i32, i32
  }
  func.func @transform_3(%arg0: i32) -> (i32, i32) {
    %c0_i32 = arith.constant 0 : i32
    %c0_i32_0 = arith.constant 0 : i32
    return %arg0, %c0_i32 : i32, i32
  }
}

</mosaic_0001>

<bundles_post_ra>
// kernel: _forward.2
= control target key start
LH: loop header
LB: loop body
LE: loop exit
PB: predicated region body
PF: predicated region fallthrough
CT: control target
= control target key end

     0   :  { %s519_s12 = smov 0   ;;  %s556_s0 = inlined_call_operand.vmem [shape: bf16[128,27], index: 0, kind: input, shape index: {}]   ;;  %s557_s1 = inlined_call_operand.vmem [shape: bf16[27,8], index: 1, kind: input, shape index: {}]   ;;  %s558_s2 = inlined_call_operand.vmem [shape: f32[1,8], index: 2, kind: input, shape index: {}]   ;;  %s559_s3 = inlined_call_operand.vmem [shape: bf16[128,8], index: 3, kind: output, shape index: {}]  }
   0x1 LB: > { %s415_s13 = sadd.s32 4294967295, %s496_s12   ;;  %p419_p0 = scmp.ge.s32.totalorder %s496_s12, 1  ;;  %s496_s12 = sphi %s519_s12, %s13_s12  }
   0x2   : > { %p138_p1 = scmp.lt.s32.totalorder %s496_s12, 3 }
   0x4   : > { %p139_p2 = pnand %p419_p0, %p138_p1 }
   0x5   : > { %v484_v0 = vld [vmem:[%s557_s1] sm:$0xff] (!%p139_p2)   ;;  %vm238_vm0 = vcmask (!%p139_p2), 1044480   ;;  %v485_v1 = vld [vmem:[%s557_s1 + $0x8] sm:$0x3f] (!%p139_p2)   ;;  %vm239_vm1 = vcmask (!%p139_p2), 1045504   ;;  %s420_s18 = sshll.u32 (!%p139_p2), %s415_s13, 3 }
   0x6   : > { %142 = sbr.rel (%p139_p2) target bundleno = 240 (0xf0), region = 32  ;;  %459 = vmatprep.subr.bf16.mxu0 (!%p139_p2), %v484_v0  ;;  %471 = vmatprep.subr.bf16.mxu1 (!%p139_p2), %v484_v0  ;;  %v498_v2 = vmov (!%p139_p2), 65535   ;;  %p163_p3 = scmp.lt.s32.totalorder (!%p139_p2), %s420_s18, 15  ;;  %vm225_vm2 = vcmask (!%p139_p2), 220160   ;;  %v424_v10 = vld [vmem:[%s558_s2] ss:$0 sm:$0xff] (!%p139_p2) }
   0x7   : > { %460 = vmatpush3.bf16.msra.mxu0 (!%p139_p2), %v484_v0  ;;  %473 = vmatpush3.bf16.msra.mxu1 (!%p139_p2), %v484_v0  ;;  %v240_v3 = vsel (!%p139_p2), %vm238_vm0, 4294967295, %v498_v2  ;;  %vm350_vm3 = vcmask (!%p139_p2), 60416  }
   0x8   : > { %v241_v4 = vsel (!%p139_p2), %vm239_vm1, %v240_v3, 0 }
   0x9   : > { %v243_v5 = vand.u32 (!%p139_p2), %v485_v1, %v241_v4 }
   0xb   : > { %461 = vmatprep.subr.bf16.mxu0 (!%p139_p2), %v243_v5  ;;  %472 = vmatprep.subr.bf16.mxu1 (!%p139_p2), %v243_v5 }
   0xc   : > { %462 = vmatpush3.bf16.msra.mxu0 (!%p139_p2), %v243_v5  ;;  %474 = vmatpush3.bf16.msra.mxu1 (!%p139_p2), %v243_v5 }
   0xd   : > { %s561_s18 = smov (!%p163_p3, %s420_s18), 15 }
   0xe   : > { %s421_s19 = sshll.u32 %s561_s18, 2 }
   0xf   : > { %s166_s22 = scalar_lea.vmem %s556_s0, %s421_s19  ;;  %s172_s27 = scalar_lea.vmem %s559_s3, %s421_s19 }
  0x10   : > { %v486_v6 = vld [vmem:[%s166_s22] sm:$0xff]   ;;  %v487_v7 = vld [vmem:[%s166_s22 + $0x10] sm:$0xff]   ;;  %v488_v8 = vld [vmem:[%s166_s22 + $0x8] sm:$0xff]  }
  0x11   : > { %463 = vmatprep.mubr.msk.bf16.mxu0 %vm225_vm2, %v486_v6  ;;  %467 = vmatprep.mubr.msk.bf16.mxu1 %vm225_vm2, %v487_v7  ;;  %v489_v9 = vld [vmem:[%s166_s22 + $0x18] sm:$0xff]  }
  0x12   : > { %464 = vmatmul.mubr.msk.bf16.vlgmr.msra.gmra.mrb[0].mxu0 %vm225_vm2, %v488_v8  ;;  %468 = vmatmul.mubr.msk.bf16.vlgmr.msra.gmra.mrb[0].mxu1 %vm225_vm2, %v489_v9 }
  0xe5   : > { %v465_v11 = vpop.f32.mrb[0].mxu0  ;;  %v469_v13 = vpop.f32.mrb[0].mxu1 }
  0xe6   : > { %v288_v12 = vadd.f32 %v465_v11, %v424_v10  ;;  %v279_v14 = vpop.f32.mrb[1].mxu0  ;;  %v304_v15 = vadd.f32 %v469_v13, %v424_v10  ;;  %v295_v17 = vpop.f32.mrb[1].mxu1 }
  0xe7   : > { %v280_v16 = vadd.f32 %v424_v10, %v279_v14  ;;  %v466_v18 = vpop.f32.mrb[2].mxu0  ;;  %v296_v20 = vadd.f32 %v424_v10, %v295_v17  ;;  %v470_v22 = vpop.f32.mrb[2].mxu1 }
  0xe8   : > { %v312_v19 = vmax.f32 %v288_v12, 0.0  ;;  %v291_v21 = vadd.f32 %v466_v18, %v424_v10  ;;  %v282_v23 = vpop.f32.mrb[3].mxu0  ;;  %v316_v24 = vmax.f32 %v304_v15, 0.0  ;;  %v307_v26 = vadd.f32 %v470_v22, %v424_v10  ;;  %v298_v28 = vpop.f32.mrb[3].mxu1 }
  0xe9   : > { %v310_v25 = vmax.f32 %v280_v16, 0.0  ;;  %v283_v27 = vadd.f32 %v424_v10, %v282_v23  ;;  %v314_v30 = vmax.f32 %v296_v20, 0.0  ;;  %v299_v32 = vadd.f32 %v424_v10, %v298_v28 }
  0xea   : > { %v447_v29 = vpack.c.bf16 %v312_v19, %v312_v19  ;;  %v313_v31 = vmax.f32 %v291_v21, 0.0  ;;  %v451_v33 = vpack.c.bf16 %v316_v24, %v316_v24  ;;  %v317_v35 = vmax.f32 %v307_v26, 0.0 }
  0xeb   : > { %v445_v34 = vpack.c.bf16 %v310_v25, %v310_v25  ;;  %v311_v36 = vmax.f32 %v283_v27, 0.0  ;;  %v449_v37 = vpack.c.bf16 %v314_v30, %v314_v30  ;;  %v315_v39 = vmax.f32 %v299_v32, 0.0 }
  0xec   : > { %353 = vst.msk [vmem:[%s172_s27 + $0x8] sm:$0xf] %vm350_vm3, %v447_v29  ;;  %v448_v38 = vpack.c.bf16 %v313_v31, %v313_v31  ;;  %357 = vst.msk [vmem:[%s172_s27 + $0x18] sm:$0xf] %vm350_vm3, %v451_v33  ;;  %v452_v40 = vpack.c.bf16 %v317_v35, %v317_v35 }
  0xed   : > { %351 = vst.msk [vmem:[%s172_s27] sm:$0xf] %vm350_vm3, %v445_v34  ;;  %v446_v41 = vpack.c.bf16 %v311_v36, %v311_v36  ;;  %355 = vst.msk [vmem:[%s172_s27 + $0x10] sm:$0xf] %vm350_vm3, %v449_v37  ;;  %v450_v42 = vpack.c.bf16 %v315_v39, %v315_v39 }
  0xee   : > { %354 = vst.msk [vmem:[%s172_s27 + $0xc] sm:$0xf] %vm350_vm3, %v448_v38  ;;  %358 = vst.msk [vmem:[%s172_s27 + $0x1c] sm:$0xf] %vm350_vm3, %v452_v40 }
  0xef   : > { %352 = vst.msk [vmem:[%s172_s27 + $0x4] sm:$0xf] %vm350_vm3, %v446_v41  ;;  %356 = vst.msk [vmem:[%s172_s27 + $0x14] sm:$0xf] %vm350_vm3, %v450_v42 }
  0xf0 PF: > { %s13_s12 = sadd.s32 1, %s496_s12  }
  0xf1   : > { %p10_p4 = scmp.ge.s32.totalorder %s13_s12, 4  }
  0xf3   :  { %12 = sbr.rel (!%p10_p4) target bundleno = 1 (0x1), region = 62 }

// kernel: _forward.3
= control target key start
LH: loop header
LB: loop body
LE: loop exit
PB: predicated region body
PF: predicated region fallthrough
CT: control target
= control target key end

     0   :  { %s432_s12 = smov 0   ;;  %s467_s0 = inlined_call_operand.vmem [shape: bf16[32,72], index: 0, kind: input, shape index: {}]   ;;  %s468_s1 = inlined_call_operand.vmem [shape: bf16[72,16], index: 1, kind: input, shape index: {}]   ;;  %s469_s2 = inlined_call_operand.vmem [shape: f32[1,16], index: 2, kind: input, shape index: {}]   ;;  %s470_s3 = inlined_call_operand.vmem [shape: bf16[32,16], index: 3, kind: output, shape index: {}]  }
   0x1 LB: > { %s343_s13 = sadd.s32 4294967295, %s408_s12   ;;  %p347_p0 = scmp.ge.s32.totalorder %s408_s12, 1  ;;  %s408_s12 = sphi %s432_s12, %s13_s12  }
   0x2   : > { %p138_p1 = scmp.lt.s32.totalorder %s408_s12, 3 }
   0x4   : > { %p139_p2 = pnand %p347_p0, %p138_p1 }
   0x5   : > { %v396_v0 = vld [vmem:[%s468_s1] sm:$0xff] (!%p139_p2)   ;;  %v410_v1 = vmov (!%p139_p2), 0.0   ;;  %v397_v2 = vld [vmem:[%s468_s1 + $0x8] sm:$0xff] (!%p139_p2)   ;;  %vm411_vm0 = vmmov (!%p139_p2), 0   ;;  %s348_s18 = sshll.u32 (!%p139_p2), %s343_s13, 1  ;;  %v398_v3 = vld [vmem:[%s468_s1 + $0x10] sm:$0xff] (!%p139_p2)  }
   0x6   : > { %142 = sbr.rel (%p139_p2) target bundleno = 247 (0xf7), region = 32  ;;  %372 = vmatprep.subr.bf16.mxu0 (!%p139_p2), %v410_v1  ;;  %382 = vmatprep.mubr.msk.bf16.mxu0 (!%p139_p2), %vm411_vm0, %v410_v1  ;;  %p163_p3 = scmp.lt.s32.totalorder (!%p139_p2), %s348_s18, 3  ;;  %v399_v4 = vld [vmem:[%s468_s1 + $0x18] sm:$0xff] (!%p139_p2)   ;;  %v400_v5 = vld [vmem:[%s468_s1 + $0x20] ss:$0 sps:$4 sm:$0xff] (!%p139_p2)   ;;  %vm229_vm1 = vcmask (!%p139_p2), 1043456  }
   0x7   : > { %373 = vmatpush3.bf16.msra.mxu0 (!%p139_p2), %v396_v0  ;;  %v231_v6 = vsel (!%p139_p2), %vm229_vm1, %v400_v5, 0  ;;  %vm225_vm2 = vcmask (!%p139_p2), 588800   ;;  %v352_v8 = vld [vmem:[%s469_s2] ss:$0 sm:$0xff] (!%p139_p2)  ;;  %vm284_vm3 = vcmask (!%p139_p2), 125952  }
   0x8   : > { %374 = vmatprep.subr.bf16.mxu0 (!%p139_p2), %v410_v1 }
   0xb   : > { %375 = vmatpush3.bf16.msra.mxu0 (!%p139_p2), %v397_v2 }
   0xc   : > { %376 = vmatprep.subr.bf16.mxu0 (!%p139_p2), %v410_v1 }
   0xd   : > { %s472_s18 = smov (!%p163_p3, %s348_s18), 3 }
   0xe   : > { %s349_s21 = sshll.u32 %s472_s18, 2 }
   0xf   : > { %s166_s24 = scalar_lea.vmem %s467_s0, %s349_s21  ;;  %377 = vmatpush3.bf16.msra.mxu0 %v398_v3  ;;  %s172_s6 = scalar_lea.vmem %s470_s3, %s349_s21 }
  0x10   : > { %378 = vmatprep.subr.bf16.mxu0 %v410_v1  ;;  %v401_v7 = vld [vmem:[%s166_s24] sm:$0xff]  }
  0x13   : > { %379 = vmatpush3.bf16.msra.mxu0 %v399_v4 }
  0x14   : > { %380 = vmatprep.subr.bf16.mxu0 %v410_v1 }
  0x17   : > { %381 = vmatpush3.bf16.msra.mxu0 %v231_v6 }
  0x1a   : > { %383 = vmatmul.mubr.msk.bf16.vlgmr.msra.gmra.mrb[0].mxu0 %vm225_vm2, %v401_v7 }
  0xed   : > { %v267_v9 = vpop.f32.mrb[0].mxu0 }
  0xee   : > { %v268_v10 = vadd.f32 %v352_v8, %v267_v9  ;;  %v384_v11 = vpop.f32.mrb[1].mxu0 }
  0xef   : > { %v270_v12 = vpop.f32.mrb[2].mxu0 }
  0xf0   : > { %v274_v13 = vmax.f32 %v268_v10, 0.0  ;;  %v271_v14 = vadd.f32 %v352_v8, %v270_v12  ;;  %v385_v15 = vpop.f32.mrb[3].mxu0 }
  0xf2   : > { %v364_v16 = vpack.c.bf16 %v274_v13, %v274_v13  ;;  %v275_v17 = vmax.f32 %v271_v14, 0.0 }
  0xf4   : > { %285 = vst.msk [vmem:[%s172_s6] sm:$0xf] %vm284_vm3, %v364_v16  ;;  %v365_v18 = vpack.c.bf16 %v275_v17, %v275_v17 }
  0xf6   : > { %286 = vst.msk [vmem:[%s172_s6 + $0x4] sm:$0xf] %vm284_vm3, %v365_v18 }
  0xf7 PF: > { %s13_s12 = sadd.s32 1, %s408_s12  }
  0xf8   : > { %p10_p4 = scmp.ge.s32.totalorder %s13_s12, 4  }
  0xfa   :  { %12 = sbr.rel (!%p10_p4) target bundleno = 1 (0x1), region = 62 }

</bundles_post_ra>
